<compile_context>
chip_gen: v7x
topology: tpu7x:2x2x1
jax: 0.10.0
libtpu: 0.0.40
codegen_flags: <defaults>
</compile_context>

<pallas_src>
import functools

import jax
import jax.numpy as jnp
from jax import lax
from jax.experimental import pallas as pl
from jax.experimental.pallas import tpu as pltpu


def _renorm_max1(w, eps=1e-7):
    """torch.nn.Embedding(max_norm=1.0) row clipping (functional)."""
    norm = jnp.sqrt(jnp.sum(w * w, axis=-1, keepdims=True))
    scale = jnp.where(norm > 1.0, 1.0 / (norm + eps), 1.0)
    return w * scale


def _round_up(x, m):
    return ((x + m - 1) // m) * m


def _multires_embed_kernel(idx_ref, wcat_ref, out_ref, *,
                           tresolution, tscale, v1, v2, v3):
    # idx_ref:  (TN, 1)  f32 row tile
    # wcat_ref: (VP, OP) f32 block-diagonal renormed tables (VMEM-resident)
    # out_ref:  (TN, OP) f32 lane-dense output tile
    idx = idx_ref[...]                                     # (TN, 1)

    # Bucket arithmetic in f32 (exact while idx*tresolution < 2^24).
    t = jnp.floor(idx * tresolution)                       # idx1
    day = jnp.floor(t / 24.0)                              # idx1 // 24
    i1 = day - jnp.floor(day / 366.0) * 366.0              # (idx1 // 24) % 366
    i2 = t - day * 24.0                                    # idx1 % 24
    i3 = jnp.floor(idx / tscale)                           # idx2

    # Clamp (matches jnp.take's TPU clamping) and offset into the
    # concatenated vocabulary [w1 ; w2 ; w3].
    j1 = jnp.clip(i1, 0.0, v1 - 1.0)
    j2 = jnp.clip(i2, 0.0, v2 - 1.0) + float(v1)
    j3 = jnp.clip(i3, 0.0, v3 - 1.0) + float(v1 + v2)
    id1 = j1.astype(jnp.int32)                             # (TN, 1)
    id2 = j2.astype(jnp.int32)
    id3 = j3.astype(jnp.int32)

    tn = idx.shape[0]
    vp = wcat_ref.shape[0]
    iota = lax.broadcasted_iota(jnp.int32, (tn, vp), 1)
    # One-hot with three ones per row (one per vocab block).
    onehot = ((iota == id1) | (iota == id2) | (iota == id3)).astype(jnp.float32)

    # Single fused MXU matmul: block-diagonal weights give the concatenated
    # (e1 | e2 | e3) row directly; single unmasked lane-dense store.
    out_ref[...] = jnp.dot(onehot, wcat_ref[...],
                           preferred_element_type=jnp.float32)


def multi_resolution_embedding(idx, w1, w2, w3, *, tresolution, tscale,
                               block_rows=1024):
    """idx: (..., 1) float array (same as the PyTorch module input)."""
    lead_shape = idx.shape[:-1]
    nfeature = w1.shape[1]
    v1, v2, v3 = w1.shape[0], w2.shape[0], w3.shape[0]
    out_cols = 3 * nfeature

    idx_flat = idx.reshape(-1, 1).astype(jnp.float32)
    n = idx_flat.shape[0]

    # Row tile: large enough to amortize per-step overhead, never larger than
    # the (padded) row count itself; keep the second-minor dim 8-aligned.
    tn = min(block_rows, _round_up(max(n, 8), 8))
    n_pad = _round_up(n, tn)
    if n_pad != n:
        idx_flat = jnp.pad(idx_flat, ((0, n_pad - n), (0, 0)))

    # One-time table prep (hoisted out of the grid): max_norm renorm +
    # block-diagonal packing. Pad vocab to a multiple of 8 and output lanes
    # to a multiple of 128 for friendly layouts / unmasked stores.
    vtot = v1 + v2 + v3
    vp = _round_up(vtot, 8)
    op = _round_up(out_cols, 128)
    wcat = jnp.zeros((vp, op), dtype=jnp.float32)
    wcat = wcat.at[0:v1, 0:nfeature].set(_renorm_max1(w1.astype(jnp.float32)))
    wcat = wcat.at[v1:v1 + v2, nfeature:2 * nfeature].set(
        _renorm_max1(w2.astype(jnp.float32)))
    wcat = wcat.at[v1 + v2:vtot, 2 * nfeature:3 * nfeature].set(
        _renorm_max1(w3.astype(jnp.float32)))

    kernel = functools.partial(
        _multires_embed_kernel,
        tresolution=float(tresolution), tscale=float(tscale),
        v1=v1, v2=v2, v3=v3)

    grid = (n_pad // tn,)
    out = pl.pallas_call(
        kernel,
        out_shape=jax.ShapeDtypeStruct((n_pad, op), jnp.float32),
        grid_spec=pltpu.PrefetchScalarGridSpec(
            num_scalar_prefetch=0,
            grid=grid,
            in_specs=[
                # idx tile: pipelined per grid step.
                pl.BlockSpec((tn, 1), lambda i: (i, 0)),
                # packed tables: constant index map -> DMA'd once, VMEM-resident.
                pl.BlockSpec((vp, op), lambda i: (0, 0)),
            ],
            out_specs=pl.BlockSpec((tn, op), lambda i: (i, 0)),
        ),
        compiler_params=pltpu.CompilerParams(
            dimension_semantics=("parallel",)),
        cost_estimate=pl.CostEstimate(
            flops=2 * n_pad * vp * op,
            transcendentals=0,
            bytes_accessed=n_pad * 4 + n_pad * op * 4 + vp * op * 4),
    )(idx_flat, wcat)

    out = out[:n, :out_cols]
    return out.reshape(*lead_shape, out_cols)


def _reference(idx, w1, w2, w3, *, tresolution, tscale):
    """Pure-JAX reference mirroring the PyTorch forward."""
    idx = jnp.squeeze(idx, -1)
    idx1 = jnp.floor(idx * tresolution).astype(jnp.int32)
    idx2 = jnp.floor(idx / tscale).astype(jnp.int32)
    e1 = jnp.take(_renorm_max1(w1), (idx1 // 24) % 366, axis=0)
    e2 = jnp.take(_renorm_max1(w2), idx1 % 24, axis=0)
    e3 = jnp.take(_renorm_max1(w3), idx2, axis=0)
    return jnp.concatenate([e1, e2, e3], axis=-1)


if __name__ == "__main__":
    # Module hyper-params (small, consistent with the module's __init__).
    feature_size = 64
    nfeature = 32
    tresolution = 24.0
    tscale = 4.0
    vocab3 = int(feature_size / tscale)   # 16

    key = jax.random.PRNGKey(0)
    k_idx, k1, k2, k3 = jax.random.split(key, 4)

    # Deterministic N(0,1) init, as in torch.nn.Embedding.
    w1 = jax.random.normal(k1, (366, nfeature), dtype=jnp.float32)
    w2 = jax.random.normal(k2, (24, nfeature), dtype=jnp.float32)
    w3 = jax.random.normal(k3, (vocab3, nfeature), dtype=jnp.float32)

    # idx: (batch=2, seq=8, 1) float time values in [0, feature_size).
    idx = jax.random.uniform(
        k_idx, (2, 8, 1), dtype=jnp.float32, minval=0.0, maxval=float(feature_size)
    )

    out = multi_resolution_embedding(
        idx, w1, w2, w3, tresolution=tresolution, tscale=tscale
    )
    out = jax.block_until_ready(out)

    ref = _reference(idx, w1, w2, w3, tresolution=tresolution, tscale=tscale)
    assert out.shape == (2, 8, 3 * nfeature), out.shape
    assert jnp.allclose(out, ref, atol=1e-5, rtol=1e-5), "mismatch vs reference"

    print("KERNEL_OK")
</pallas_src>

<mosaic_0001>
module attributes {stable_mosaic.version = 11 : i64} {
  func.func @_multires_embed_kernel(%arg0: i32, %arg1: memref<16x1xf32, #tpu.memory_space<vmem>>, %arg2: memref<408x128xf32, #tpu.memory_space<vmem>>, %arg3: memref<16x128xf32, #tpu.memory_space<vmem>>) attributes {dimension_semantics = [#tpu.dimension_semantics<parallel>], iteration_bounds = array<i64: 1>, scalar_prefetch = 0 : i64, scratch_operands = 0 : i64, tpu.core_type = #tpu.core_type<tc>, window_params = [{transform_indices = @transform_0, window_bounds = array<i64: 16, 1>}, {pipeline_mode = #tpu.pipeline_mode<synchronous>, transform_indices = @transform_1, window_bounds = array<i64: 408, 128>}, {transform_indices = @transform_2, window_bounds = array<i64: 16, 128>}]} {
    %c0 = arith.constant 0 : index
    %c0_0 = arith.constant 0 : index
    %0 = vector.load %arg1[%c0, %c0_0] : memref<16x1xf32, #tpu.memory_space<vmem>>, vector<16x1xf32>
    %cst = arith.constant 2.400000e+01 : f32
    %1 = vector.broadcast %cst : f32 to vector<16x1xf32>
    %2 = arith.mulf %0, %1 : vector<16x1xf32>
    %3 = math.floor %2 : vector<16x1xf32>
    %cst_1 = arith.constant 2.400000e+01 : f32
    %4 = vector.broadcast %cst_1 : f32 to vector<16x1xf32>
    %5 = arith.divf %3, %4 : vector<16x1xf32>
    %6 = math.floor %5 : vector<16x1xf32>
    %cst_2 = arith.constant 3.660000e+02 : f32
    %7 = vector.broadcast %cst_2 : f32 to vector<16x1xf32>
    %8 = arith.divf %6, %7 : vector<16x1xf32>
    %9 = math.floor %8 : vector<16x1xf32>
    %cst_3 = arith.constant 3.660000e+02 : f32
    %10 = vector.broadcast %cst_3 : f32 to vector<16x1xf32>
    %11 = arith.mulf %9, %10 : vector<16x1xf32>
    %12 = arith.subf %6, %11 : vector<16x1xf32>
    %cst_4 = arith.constant 2.400000e+01 : f32
    %13 = vector.broadcast %cst_4 : f32 to vector<16x1xf32>
    %14 = arith.mulf %6, %13 : vector<16x1xf32>
    %15 = arith.subf %3, %14 : vector<16x1xf32>
    %cst_5 = arith.constant 4.000000e+00 : f32
    %16 = vector.broadcast %cst_5 : f32 to vector<16x1xf32>
    %17 = arith.divf %0, %16 : vector<16x1xf32>
    %18 = math.floor %17 : vector<16x1xf32>
    %cst_6 = arith.constant 0.000000e+00 : f32
    %cst_7 = arith.constant 3.650000e+02 : f32
    %19 = vector.broadcast %cst_6 : f32 to vector<16x1xf32>
    %20 = arith.maximumf %19, %12 : vector<16x1xf32>
    %21 = vector.broadcast %cst_7 : f32 to vector<16x1xf32>
    %22 = arith.minimumf %21, %20 : vector<16x1xf32>
    %cst_8 = arith.constant 0.000000e+00 : f32
    %cst_9 = arith.constant 2.300000e+01 : f32
    %23 = vector.broadcast %cst_8 : f32 to vector<16x1xf32>
    %24 = arith.maximumf %23, %15 : vector<16x1xf32>
    %25 = vector.broadcast %cst_9 : f32 to vector<16x1xf32>
    %26 = arith.minimumf %25, %24 : vector<16x1xf32>
    %cst_10 = arith.constant 3.660000e+02 : f32
    %27 = vector.broadcast %cst_10 : f32 to vector<16x1xf32>
    %28 = arith.addf %26, %27 : vector<16x1xf32>
    %cst_11 = arith.constant 0.000000e+00 : f32
    %cst_12 = arith.constant 1.500000e+01 : f32
    %29 = vector.broadcast %cst_11 : f32 to vector<16x1xf32>
    %30 = arith.maximumf %29, %18 : vector<16x1xf32>
    %31 = vector.broadcast %cst_12 : f32 to vector<16x1xf32>
    %32 = arith.minimumf %31, %30 : vector<16x1xf32>
    %cst_13 = arith.constant 3.900000e+02 : f32
    %33 = vector.broadcast %cst_13 : f32 to vector<16x1xf32>
    %34 = arith.addf %32, %33 : vector<16x1xf32>
    %35 = arith.fptosi %22 : vector<16x1xf32> to vector<16x1xi32>
    %36 = arith.fptosi %28 : vector<16x1xf32> to vector<16x1xi32>
    %37 = arith.fptosi %34 : vector<16x1xf32> to vector<16x1xi32>
    %38 = tpu.iota {dimensions = array<i32: 1>} : vector<16x408xi32>
    %39 = vector.broadcast %35 : vector<16x1xi32> to vector<16x408xi32>
    %40 = arith.cmpi eq, %38, %39 : vector<16x408xi32>
    %41 = vector.broadcast %36 : vector<16x1xi32> to vector<16x408xi32>
    %42 = arith.cmpi eq, %38, %41 : vector<16x408xi32>
    %43 = arith.ori %40, %42 : vector<16x408xi1>
    %44 = vector.broadcast %37 : vector<16x1xi32> to vector<16x408xi32>
    %45 = arith.cmpi eq, %38, %44 : vector<16x408xi32>
    %46 = arith.ori %43, %45 : vector<16x408xi1>
    %47 = arith.extui %46 : vector<16x408xi1> to vector<16x408xi32>
    %48 = arith.sitofp %47 : vector<16x408xi32> to vector<16x408xf32>
    %c0_14 = arith.constant 0 : index
    %c0_15 = arith.constant 0 : index
    %49 = vector.load %arg2[%c0_14, %c0_15] : memref<408x128xf32, #tpu.memory_space<vmem>>, vector<408x128xf32>
    %cst_16 = arith.constant dense<0.000000e+00> : vector<16x128xf32>
    %50 = tpu.matmul %48, %49, %cst_16 {dimension_numbers = #tpu.dot_dimension_numbers<[1], [0], [0], [1], [0, 0, 1, 1], [], []>} : vector<16x408xf32>, vector<408x128xf32>, vector<16x128xf32> -> vector<16x128xf32>
    %c0_17 = arith.constant 0 : index
    %c0_18 = arith.constant 0 : index
    %51 = vector.load %arg3[%c0_17, %c0_18] : memref<16x128xf32, #tpu.memory_space<vmem>>, vector<16x128xf32>
    tpu.vector_store %arg3[%c0_17, %c0_18], %50 {strides = array<i32>} : memref<16x128xf32, #tpu.memory_space<vmem>>, vector<16x128xf32>,
    return
  }
  func.func @transform_0(%arg0: i32) -> (i32, i32) {
    %c0_i32 = arith.constant 0 : i32
    %c0_i32_0 = arith.constant 0 : i32
    return %arg0, %c0_i32 : i32, i32
  }
  func.func @transform_1(%arg0: i32) -> (i32, i32) {
    %c0_i32 = arith.constant 0 : i32
    %c0_i32_0 = arith.constant 0 : i32
    %c0_i32_1 = arith.constant 0 : i32
    return %c0_i32, %c0_i32_0 : i32, i32
  }
  func.func @transform_2(%arg0: i32) -> (i32, i32) {
    %c0_i32 = arith.constant 0 : i32
    %c0_i32_0 = arith.constant 0 : i32
    return %arg0, %c0_i32 : i32, i32
  }
}

</mosaic_0001>

<bundles_post_ra>
// kernel: tpu_custom_call.1
= control target key start
LH: loop header
LB: loop body
LE: loop exit
PB: predicated region body
PF: predicated region fallthrough
CT: control target
= control target key end

     0   :  { %7 = vsyncpa [#allocation3], 0  ;;  %s647_s0 = inlined_call_operand.vmem [shape: f32[16,1], index: 0, kind: input, shape index: {}]   ;;  %s648_s1 = inlined_call_operand.hbm [shape: f32[408,128], index: 1, kind: input, shape index: {}]   ;;  %s649_s2 = inlined_call_operand.hbm [shape: f32[16,128], index: 2, kind: output, shape index: {}]  }
   0x1   :  { %8 = vsyncpa [#allocation4], 0  ;;  %s566_s9 = smov [#allocation2]   ;;  %s518_s13 = scalar_lea.hbm %s648_s1, 6528 }
   0x2   :  { %s16_s10 = sshll.u32 %s566_s9, 4  ;;  %p519_p0 = scmp.ne.s32.totalorder %s648_s1, %s518_s13  ;;  %s17_s10 = int_to_ptr.vmem [resolvable:$true] %s16_s10 }
   0x3   :  { %p522_p1 = scmp.lt.u32.totalorder %s518_s13, %s648_s1 }
   0x5   :  { %p524_p2 = pnand %p522_p1, %p519_p0 }
   0x7   :  { %527 = shalt.err (!%p524_p2)
}
   0x8   :  { %s528_s18 = scalar_lea.vmem %s17_s10, 6528  ;;  %p533_p4 = scmp.lt.s32.totalorder %s17_s10, %s17_s10 }
   0x9   :  { %p529_p3 = scmp.ne.s32.totalorder %s17_s10, %s528_s18  ;;  %p534_p5 = scmp.lt.s32.totalorder %s528_s18, %s528_s18 }
   0xb   :  { %p535_p6 = por %p534_p5, %p533_p4 }
   0xd   :  { %p536_p7 = pnand %p535_p6, %p529_p3 }
   0xf   :  { %539 = shalt.err (!%p536_p7)
}
  0x10   :  { %s567_s19 = smov 128   ;;  %s568_s20 = smov 8  }
  0x11   :  { %22 = dma.hbm_to_vmem [thread:$0]  %s648_s1, 6528, %s17_s10, [#allocation3], %s567_s19, %s567_s19, %s568_s20  }
  0x12   :  { %562 = dma.done.wait [#allocation3], 6528  }
  0x13   :  { %563 = vsyncadd [#allocation3], 4294960768  ;;  %v569_v0 = vmov 0   ;;  %v570_v1 = vmov 0.0|0.0   ;;  %v26_v2 = vld [vmem:[%s647_s0] sm:$0xff]  ;;  %v27_v3 = vld [vmem:[%s647_s0 + $0x8] sm:$0xff] }
  0x14   :  { %516 = vset.pattern.permute.xlu1 %v569_v0  ;;  %517 = vset.pattern.permute.xlu0 %v569_v0  ;;  %v188_v4 = vld [vmem:[#allocation2 + $0x100] sm:$0xff]  ;;  %v51_v5 = vmul.f32 0.25, %v26_v2  ;;  %v28_v6 = vmul.f32 24.0, %v26_v2  ;;  %v29_v7 = vmul.f32 24.0, %v27_v3  ;;  %v52_v8 = vmul.f32 0.25, %v27_v3  ;;  %v189_v9 = vld [vmem:[#allocation2 + $0x108] sm:$0xff] }
  0x15   :  { %469 = vmatprep.subr.bf16.mxu1 %v570_v1  ;;  %v172_v10 = vld [vmem:[#allocation2 + $0x80] sm:$0xff]  ;;  %v470_v11 = vpack.c.bf16 %v189_v9, %v188_v4  ;;  %v173_v12 = vld [vmem:[#allocation2 + $0x88] sm:$0xff]  ;;  %v190_v13 = vld [vmem:[#allocation2 + $0x110] sm:$0xff]  ;;  %s573_s0 = smov [#allocation5]  }
  0x16   :  { %v191_v14 = vld [vmem:[#allocation2 + $0x118] sm:$0xff]  ;;  %v53_v15 = vfloor.f32 %v51_v5  ;;  %v30_v16 = vfloor.f32 %v28_v6  ;;  %v31_v17 = vfloor.f32 %v29_v7  ;;  %v156_v18 = vld [vmem:[#allocation2] sm:$0xff]  ;;  %v157_v19 = vld [vmem:[#allocation2 + $0x8] sm:$0xff]  ;;  %v54_v21 = vfloor.f32 %v52_v8  ;;  %s371_s1 = sshll.u32 %s573_s0, 4  ;;  %s372_s1 = int_to_ptr.vmem [resolvable:$true] %s371_s1 }
  0x17   :  { %v174_v20 = vld [vmem:[#allocation2 + $0x90] sm:$0xff]  ;;  %471 = vmatpush1.bf16.msra.mxu1 %v470_v11  ;;  %v437_v22 = vpack.c.bf16 %v173_v12, %v172_v10  ;;  %v473_v23 = vpack.c.bf16 %v191_v14, %v190_v13  ;;  %v439_v24 = vpack.c.bf16 %v157_v19, %v156_v18  ;;  %v175_v25 = vld [vmem:[#allocation2 + $0x98] sm:$0xff]  ;;  %v192_v26 = vld [vmem:[#allocation2 + $0x120] sm:$0xff]  ;;  %s540_s27 = scalar_lea.vmem %s372_s1, 256  ;;  %p545_p9 = scmp.lt.s32.totalorder %s372_s1, %s372_s1 }
  0x18   :  { %v65_v27 = vmax.f32 %v53_v15, 0.0  ;;  %v33_v28 = vmul.f32 0.041666668, %v30_v16  ;;  %v34_v29 = vmul.f32 0.041666668, %v31_v17  ;;  %472 = vmatprep.subr.bf16.mxu1 %v570_v1  ;;  %v193_v30 = vld [vmem:[#allocation2 + $0x128] sm:$0xff]  ;;  %v441_v31 = vpack.c.bf16 %v175_v25, %v174_v20  ;;  %p541_p8 = scmp.ne.s32.totalorder %s372_s1, %s540_s27  ;;  %p546_p10 = scmp.lt.s32.totalorder %s540_s27, %s540_s27 }
  0x19   :  { %438 = vmatprep.subr.bf16.mxu0 %v437_v22  ;;  %v158_v32 = vld [vmem:[#allocation2 + $0x10] sm:$0xff]  ;;  %v159_v33 = vld [vmem:[#allocation2 + $0x18] sm:$0xff]  ;;  %v176_v34 = vld [vmem:[#allocation2 + $0xa0] sm:$0xff]  ;;  %v66_v41 = vmax.f32 %v54_v21, 0.0  ;;  %v476_v42 = vpack.c.bf16 %v193_v30, %v192_v26 }
  0x1a   :  { %v67_v35 = vmin.f32 %v65_v27, 15.0  ;;  %v612_v36 = vfloor.f32 %v33_v28  ;;  %v36_v37 = vfloor.f32 %v34_v29  ;;  %440 = vmatpush3.bf16.msra.mxu0 %v439_v24  ;;  %v177_v38 = vld [vmem:[#allocation2 + $0xa8] sm:$0xff]  ;;  %v194_v39 = vld [vmem:[#allocation2 + $0x130] sm:$0xff]  ;;  %v195_v40 = vld [vmem:[#allocation2 + $0x138] sm:$0xff]  ;;  %v443_v43 = vpack.c.bf16 %v159_v33, %v158_v32  ;;  %p547_p11 = por %p546_p10, %p545_p9 }
  0x1b   :  { %474 = vmatpush1.bf16.msra.mxu1 %v473_v23  ;;  %442 = vmatprep.subr.bf16.mxu0 %v441_v31  ;;  %v445_v44 = vpack.c.bf16 %v177_v38, %v176_v34  ;;  %v160_v45 = vld [vmem:[#allocation2 + $0x20] sm:$0xff]  ;;  %v161_v46 = vld [vmem:[#allocation2 + $0x28] sm:$0xff]  ;;  %v178_v47 = vld [vmem:[#allocation2 + $0xb0] sm:$0xff]  ;;  %v68_v59 = vmin.f32 %v66_v41, 15.0  ;;  %v479_v61 = vpack.c.bf16 %v195_v40, %v194_v39 }
  0x1c   :  { %v69_v48 = vadd.f32 390.0, %v67_v35  ;;  %v46_v49 = vmul.f32 24.0, %v612_v36  ;;  %v39_v50 = vmul.f32 0.0027322404, %v36_v37  ;;  %v38_v51 = vmul.f32 0.0027322404, %v612_v36  ;;  %475 = vmatprep.subr.bf16.mxu1 %v570_v1  ;;  %p548_p12 = pnand %p547_p11, %p541_p8 }
  0x1d   :  { %v47_v52 = vmul.f32 24.0, %v36_v37  ;;  %v447_v53 = vpack.c.bf16 %v161_v46, %v160_v45  ;;  %v179_v54 = vld [vmem:[#allocation2 + $0xb8] sm:$0xff]  ;;  %v196_v63 = vld [vmem:[#allocation2 + $0x140] sm:$0xff]  ;;  %v162_v0 = vld [vmem:[#allocation2 + $0x30] sm:$0xff] }
  0x1e   :  { %v504_v55 = vtrunc.f32 %v69_v48  ;;  %v48_v56 = vsub.f32 %v30_v16, %v46_v49  ;;  %v41_v57 = vfloor.f32 %v39_v50  ;;  %v40_v58 = vfloor.f32 %v38_v51  ;;  %444 = vmatpush3.bf16.msra.mxu0 %v443_v43  ;;  %v163_v2 = vld [vmem:[#allocation2 + $0x38] sm:$0xff]  ;;  %v197_v7 = vld [vmem:[#allocation2 + $0x148] sm:$0xff]  ;;  %v180_v8 = vld [vmem:[#allocation2 + $0xc0] sm:$0xff] }
  0x1f   :  { %v49_v60 = vsub.f32 %v31_v17, %v47_v52  ;;  %477 = vmatpush1.bf16.msra.mxu1 %v476_v42  ;;  %446 = vmatprep.subr.bf16.mxu0 %v445_v44  ;;  %v449_v62 = vpack.c.bf16 %v179_v54, %v178_v47  ;;  %v181_v9 = vld [vmem:[#allocation2 + $0xc8] sm:$0xff]  ;;  %v451_v14 = vpack.c.bf16 %v163_v2, %v162_v0  ;;  %v164_v15 = vld [vmem:[#allocation2 + $0x40] sm:$0xff]  ;;  %v70_v17 = vadd.f32 390.0, %v68_v59  ;;  %v198_v21 = vld [vmem:[#allocation2 + $0x150] sm:$0xff] }
  0x20   :  { %v505_v3 = vcvt.f32.s32 %v504_v55  ;;  %v59_v4 = vmax.f32 %v48_v56, 0.0  ;;  %v43_v5 = vmul.f32 366.0, %v41_v57  ;;  %v42_v6 = vmul.f32 366.0, %v40_v58  ;;  %478 = vmatprep.subr.bf16.mxu1 %v570_v1  ;;  %v165_v16 = vld [vmem:[#allocation2 + $0x48] sm:$0xff]  ;;  %v199_v25 = vld [vmem:[#allocation2 + $0x158] sm:$0xff]  ;;  %v182_v26 = vld [vmem:[#allocation2 + $0xd0] sm:$0xff] }
  0x21   :  { %v60_v10 = vmax.f32 %v49_v60, 0.0  ;;  %v482_v19 = vpack.c.bf16 %v197_v7, %v196_v63  ;;  %v453_v20 = vpack.c.bf16 %v181_v9, %v180_v8  ;;  %v183_v27 = vld [vmem:[#allocation2 + $0xd8] sm:$0xff]  ;;  %v455_v28 = vpack.c.bf16 %v165_v16, %v164_v15  ;;  %v200_v35 = vld [vmem:[#allocation2 + $0x160] sm:$0xff]  ;;  %v201_v42 = vld [vmem:[#allocation2 + $0x168] sm:$0xff] }
  0x22   :  { %119 = vperm.xlu1 %516, %v505_v3   ;;  %v61_v11 = vmin.f32 %v59_v4, 23.0  ;;  %v45_v12 = vsub.f32 %v36_v37, %v43_v5  ;;  %v44_v13 = vsub.f32 %v612_v36, %v42_v6  ;;  %448 = vmatpush3.bf16.msra.mxu0 %v447_v53  ;;  %v485_v33 = vpack.c.bf16 %v199_v25, %v198_v21  ;;  %v166_v36 = vld [vmem:[#allocation2 + $0x50] sm:$0xff]  ;;  %v167_v37 = vld [vmem:[#allocation2 + $0x58] sm:$0xff]  ;;  %v184_v43 = vld [vmem:[#allocation2 + $0xe0] sm:$0xff] }
  0x23   :  { %v62_v18 = vmin.f32 %v60_v10, 23.0  ;;  %480 = vmatpush1.bf16.msra.mxu1 %v479_v61  ;;  %450 = vmatprep.subr.bf16.mxu0 %v449_v62  ;;  %v457_v34 = vpack.c.bf16 %v183_v27, %v182_v26  ;;  %v506_v41 = vtrunc.f32 %v70_v17  ;;  %v185_v44 = vld [vmem:[#allocation2 + $0xe8] sm:$0xff]  ;;  %v459_v48 = vpack.c.bf16 %v167_v37, %v166_v36  ;;  %v202_v51 = vld [vmem:[#allocation2 + $0x170] sm:$0xff]  ;;  %v168_v52 = vld [vmem:[#allocation2 + $0x60] sm:$0xff] }
  0x24   :  { %v63_v22 = vadd.f32 366.0, %v61_v11  ;;  %v56_v23 = vmax.f32 %v45_v12, 0.0  ;;  %v55_v24 = vmax.f32 %v44_v13, 0.0  ;;  %481 = vmatprep.subr.bf16.mxu1 %v570_v1  ;;  %v488_v49 = vpack.c.bf16 %v201_v42, %v200_v35  ;;  %v169_v53 = vld [vmem:[#allocation2 + $0x68] sm:$0xff]  ;;  %v203_v55 = vld [vmem:[#allocation2 + $0x178] sm:$0xff]  ;;  %v186_v56 = vld [vmem:[#allocation2 + $0xf0] sm:$0xff] }
  0x25   :  { %v64_v32 = vadd.f32 366.0, %v62_v18  ;;  %v461_v50 = vpack.c.bf16 %v185_v44, %v184_v43  ;;  %v507_v54 = vcvt.f32.s32 %v506_v41  ;;  %v187_v57 = vld [vmem:[#allocation2 + $0xf8] sm:$0xff]  ;;  %v463_v59 = vpack.c.bf16 %v169_v53, %v168_v52  ;;  %v170_v62 = vld [vmem:[#allocation2 + $0x70] sm:$0xff]  ;;  %v204_v0 = vld [vmem:[#allocation2 + $0x180] sm:$0xff] }
  0x26   :  { %v500_v29 = vtrunc.f32 %v63_v22  ;;  %v58_v30 = vmin.f32 %v56_v23, 365.0  ;;  %v57_v31 = vmin.f32 %v55_v24, 365.0  ;;  %452 = vmatpush3.bf16.msra.mxu0 %v451_v14  ;;  %v491_v60 = vpack.c.bf16 %v203_v55, %v202_v51  ;;  %v171_v63 = vld [vmem:[#allocation2 + $0x78] sm:$0xff]  ;;  %v205_v2 = vld [vmem:[#allocation2 + $0x188] sm:$0xff]  ;;  %v206_v6 = vld [vmem:[#allocation2 + $0x190] sm:$0xff] }
  0x27   :  { %483 = vmatpush1.bf16.msra.mxu1 %v482_v19  ;;  %454 = vmatprep.subr.bf16.mxu0 %v453_v20  ;;  %v502_v47 = vtrunc.f32 %v64_v32  ;;  %v465_v61 = vpack.c.bf16 %v187_v57, %v186_v56  ;;  %v467_v3 = vpack.c.bf16 %v171_v63, %v170_v62  ;;  %v494_v4 = vpack.c.bf16 %v205_v2, %v204_v0 }
  0x28   :  { %v501_v38 = vcvt.f32.s32 %v500_v29  ;;  %v498_v39 = vtrunc.f32 %v58_v30  ;;  %v496_v40 = vtrunc.f32 %v57_v31  ;;  %484 = vmatprep.subr.bf16.mxu1 %v570_v1  ;;  %v571_v5 = vmov 0.0  }
  0x29   :  { %v503_v58 = vcvt.f32.s32 %v502_v47  ;;  %v77_v7 = vlaneseq  ;;  %v572_v15 = vmov 1.0   ;;  %v651_v17 = vmov 0 }
  0x2a   :  { %97 = vperm.xlu0 %517, %v501_v38   ;;  %v499_v45 = vcvt.f32.s32 %v498_v39  ;;  %v497_v46 = vcvt.f32.s32 %v496_v40  ;;  %456 = vmatpush3.bf16.msra.mxu0 %v455_v28 }
  0x2b   :  { %486 = vmatpush1.bf16.msra.mxu1 %v485_v33  ;;  %458 = vmatprep.subr.bf16.mxu0 %v457_v34  ;;  %v78_v8 = vand.u32 127, %v77_v7 }
  0x2c   :  { %86 = vperm.xlu1 %516, %v499_v45   ;;  %487 = vmatprep.subr.bf16.mxu1 %v570_v1 }
  0x2d   :  { %v79_v11 = vadd.s32 128, %v78_v8  ;;  %v81_v14 = vadd.s32 384, %v78_v8 }
  0x2e   :  { %83 = vperm.xlu0 %517, %v497_v46   ;;  %460 = vmatpush3.bf16.msra.mxu0 %v459_v48 }
  0x2f   :  { %489 = vmatpush1.bf16.msra.mxu1 %v488_v49  ;;  %462 = vmatprep.subr.bf16.mxu0 %v461_v50 }
  0x30   :  { %122 = vperm.xlu1 %516, %v507_v54   ;;  %490 = vmatprep.subr.bf16.mxu1 %v570_v1 }
  0x32   :  { %100 = vperm.xlu0 %517, %v503_v58   ;;  %464 = vmatpush3.bf16.msra.mxu0 %v463_v59 }
  0x33   :  { %492 = vmatpush1.bf16.msra.mxu1 %v491_v60  ;;  %466 = vmatprep.subr.bf16.mxu0 %v465_v61 }
  0x34   :  { %493 = vmatprep.subr.bf16.mxu1 %v570_v1  ;;  %v80_v1 = vadd.s32 256, %v78_v8 }
  0x36   :  { %468 = vmatpush3.bf16.msra.mxu0 %v467_v3 }
  0x37   :  { %495 = vmatpush1.bf16.msra.mxu1 %v494_v4 }
  0x38   :  { %325 = vmatprep.subr.mxu1 %v571_v5 }
  0x3b   :  { %326 = vmatpush1.msra.mxu1 %v206_v6 }
  0xa1   :  { %v120_v9 = vpop.permute.xlu1 %119 }
  0xa2   :  { %vm125_vm4 = vcmp.eq.s32.totalorder %v79_v11, %v120_v9  ;;  %vm124_vm8 = vcmp.eq.s32.totalorder %v78_v8, %v120_v9 }
  0xa9   :  { %v98_v10 = vpop.permute.xlu0 %97 }
  0xaa   :  { %vm103_vm1 = vcmp.eq.s32.totalorder %v79_v11, %v98_v10  ;;  %vm102_vm6 = vcmp.eq.s32.totalorder %v78_v8, %v98_v10  ;;  %vm105_vm14 = vcmp.eq.s32.totalorder %v81_v14, %v98_v10 }
  0xab   :  { %v87_v13 = vpop.permute.xlu1 %86 }
  0xac   :  { %vm95_vm10 = vcmp.eq.s32.totalorder %v81_v14, %v87_v13 }
  0xad   :  { %v84_v12 = vpop.permute.xlu0 %83 }
  0xae   :  { %vm89_vm0 = vcmp.eq.s32.totalorder %v79_v11, %v84_v12  ;;  %vm88_vm2 = vcmp.eq.s32.totalorder %v78_v8, %v84_v12  ;;  %vm91_vm9 = vcmp.eq.s32.totalorder %v81_v14, %v84_v12  ;;  %vm90_vm15 = vcmp.eq.s32.totalorder %v80_v1, %v84_v12 }
  0xaf   :  { %vm111_vm3 = vmor %vm89_vm0, %vm103_vm1  ;;  %vm127_vm1 = vcmp.eq.s32.totalorder %v81_v14, %v120_v9  ;;  %v123_v18 = vpop.permute.xlu1 %122 }
  0xb0   :  { %vm133_vm5 = vmor %vm111_vm3, %vm125_vm4  ;;  %vm650_vm3 = vcmask 195584  }
  0xb1   :  { %391 = vmatprep.mubr.msk.f32.mxu0 %vm133_vm5, %v572_v15  ;;  %v101_v16 = vpop.permute.xlu0 %100  ;;  %vm110_vm7 = vmor %vm88_vm2, %vm102_vm6  ;;  %vm104_vm2 = vcmp.eq.s32.totalorder %v80_v1, %v98_v10 }
  0xb2   :  { %vm109_vm11 = vcmp.eq.s32.totalorder %v81_v14, %v101_v16  ;;  %vm132_vm12 = vmor %vm110_vm7, %vm124_vm8  ;;  %vm107_vm4 = vcmp.eq.s32.totalorder %v79_v11, %v101_v16  ;;  %vm126_vm7 = vcmp.eq.s32.totalorder %v80_v1, %v120_v9  ;;  %vm106_vm8 = vcmp.eq.s32.totalorder %v78_v8, %v101_v16 }
  0xb3   :  { %vm624_vm13 = vmor %vm95_vm10, %vm109_vm11  ;;  %392 = vmatmul.mubr.msk.f32.vlgmr.msra.gmra.mrb[0].mxu0 %vm132_vm12, %v572_v15  ;;  %vm93_vm11 = vcmp.eq.s32.totalorder %v79_v11, %v87_v13 }
  0xb4   :  { %v652_v17 = vsel %vm624_vm13, 4294967295, %v651_v17  ;;  %vm113_vm0 = vmor %vm91_vm9, %vm105_vm14  ;;  %vm129_vm13 = vcmp.eq.s32.totalorder %v79_v11, %v123_v18  ;;  %vm92_vm14 = vcmp.eq.s32.totalorder %v78_v8, %v87_v13 }
  0xb5   :  { %vm135_vm5 = vmor %vm113_vm0, %vm127_vm1  ;;  %vm128_vm0 = vcmp.eq.s32.totalorder %v78_v8, %v123_v18  ;;  %vm108_vm1 = vcmp.eq.s32.totalorder %v80_v1, %v101_v16 }
  0xb6   :  { %v386_v19 = vsel %vm135_vm5, 1.0, %v571_v5  ;;  %vm112_vm6 = vmor %vm90_vm15, %vm104_vm2  ;;  %vm131_vm2 = vcmp.eq.s32.totalorder %v81_v14, %v123_v18 }
  0xb7   :  { %395 = vmatprep.mubr.msk.f32.mxu1 %vm650_vm3, %v386_v19  ;;  %vm134_vm10 = vmor %vm112_vm6, %vm126_vm7  ;;  %vm653_vm3 = vnez %v652_v17  ;;  %vm94_vm7 = vcmp.eq.s32.totalorder %v80_v1, %v87_v13 }
  0xb8   :  { %396 = vmatmul.mubr.msk.f32.vlgmr.msra.gmra.mrb[0].mxu1 %vm134_vm10, %v572_v15  ;;  %vm115_vm12 = vmor %vm93_vm11, %vm107_vm4  ;;  %vm130_vm10 = vcmp.eq.s32.totalorder %v80_v1, %v123_v18  ;;  %vm654_vm11 = vcmask 195584  }
  0xb9   :  { %vm137_vm9 = vmor %vm115_vm12, %vm129_vm13 }
  0xba   :  { %393 = vmatprep.mubr.msk.f32.mxu0 %vm137_vm9, %v572_v15  ;;  %vm114_vm5 = vmor %vm92_vm14, %vm106_vm8 }
  0xbb   :  { %vm136_vm15 = vmor %vm114_vm5, %vm128_vm0 }
  0xbc   :  { %394 = vmatmul.mubr.msk.f32.gmra.mrb[2].mxu0 %vm136_vm15, %v572_v15  ;;  %vm139_vm6 = vmor %vm653_vm3, %vm131_vm2 }
  0xbd   :  { %v390_v20 = vsel %vm139_vm6, 1.0, %v571_v5  ;;  %vm116_vm4 = vmor %vm94_vm7, %vm108_vm1 }
  0xbe   :  { %397 = vmatprep.mubr.msk.f32.mxu1 %vm654_vm11, %v390_v20  ;;  %vm138_vm12 = vmor %vm116_vm4, %vm130_vm10 }
  0xbf   :  { %398 = vmatmul.mubr.msk.f32.gmra.mrb[2].mxu1 %vm138_vm12, %v572_v15 }
 0x186   :  { %v431_v21 = vpop.f32.mrb[0].mxu0 }
 0x187   :  { %v432_v22 = vpop.f32.mrb[1].mxu0 }
 0x188   :  { %v433_v23 = vadd.f32 %v432_v22, %v431_v21 }
 0x18b   :  { %v355_v24 = vpop.f32.mrb[0].mxu1 }
 0x18c   :  { %v356_v25 = vadd.f32 %v433_v23, %v355_v24  ;;  %v357_v26 = vpop.f32.mrb[1].mxu1 }
 0x18e   :  { %364 = vst [vmem:[#allocation5] sm:$0xff] %v356_v25 }
 0x18f   :  { %v434_v27 = vpop.f32.mrb[2].mxu0 }
 0x190   :  { %v435_v28 = vpop.f32.mrb[3].mxu0 }
 0x191   :  { %v436_v29 = vadd.f32 %v435_v28, %v434_v27 }
 0x192   :  { %v360_v30 = vpop.f32.mrb[2].mxu1 }
 0x193   :  { %v361_v31 = vadd.f32 %v436_v29, %v360_v30  ;;  %v362_v32 = vpop.f32.mrb[3].mxu1 }
 0x195   :  { %365 = vst [vmem:[#allocation5 + $0x8] sm:$0xff] %v361_v31 }
 0x196   :  { %551 = shalt.err (!%p548_p12)
}
 0x197   :  { %s552_s30 = scalar_lea.hbm %s649_s2, 256 }
 0x198   :  { %p553_p13 = scmp.ne.s32.totalorder %s649_s2, %s552_s30  ;;  %p556_p0 = scmp.lt.u32.totalorder %s552_s30, %s649_s2 }
 0x19a   :  { %p558_p1 = pnand %p556_p0, %p553_p13 }
 0x19c   :  { %561 = shalt.err (!%p558_p1)
}
 0x19d   :  { %377 = dma.vmem_to_hbm [thread:$0]  %s372_s1, 256, %s649_s2, [#allocation4], %s567_s19, %s567_s19, %s568_s20  }
 0x19e   :  { %564 = dma.done.wait [#allocation4], 256  }
 0x19f   :  { %565 = vsyncadd [#allocation4], 4294967040 }
 0x1a0   :  { %381 = vsyncpa [#allocation3], 1 }
 0x1a1   :  { %382 = vsyncpa [#allocation4], 1 }

</bundles_post_ra>
